<compile_context>
chip_gen: v5e
topology: v5e:2x2
jax: 0.10.0
libtpu: 0.0.40
codegen_flags: <defaults>
</compile_context>

<pallas_src>
import functools

import jax
import jax.numpy as jnp
from jax.experimental import pallas as pl
from jax.experimental.pallas import tpu as pltpu


def _round_up(x: int, m: int) -> int:
    return ((x + m - 1) // m) * m


def _cdiv(a: int, b: int) -> int:
    return (a + b - 1) // b


def _mlp_kernel(obs_ref, act_ref, w1o_ref, w1a_ref, b1_ref, w2_ref, b2_ref,
                w3_ref, b3_ref, o_ref):
    # Cast f32 input tiles to the MXU dtype *inside* the kernel (VPU slack):
    # the wrapper passes raw f32, so inputs are read from HBM exactly once.
    cdt = w1o_ref.dtype
    obs_c = obs_ref[...].astype(cdt)
    act_c = act_ref[...].astype(cdt)

    # ---- Layer 1: fused concat via split matmul (MXU, f32 accumulation) ----
    # concat([obs, act]) @ W1  ==  obs @ W1[:obs_dim] + act @ W1[obs_dim:]
    h1 = jnp.dot(obs_c, w1o_ref[...], preferred_element_type=jnp.float32)
    h1 = h1 + jnp.dot(act_c, w1a_ref[...], preferred_element_type=jnp.float32)
    h1 = jnp.maximum(h1 + b1_ref[...], 0.0)              # f32 bias + ReLU (VPU)

    # ---- Layer 2 ----
    h2 = jnp.dot(h1.astype(w2_ref.dtype), w2_ref[...],
                 preferred_element_type=jnp.float32)
    h2 = jnp.maximum(h2 + b2_ref[...], 0.0)

    # ---- Layer 3 (H -> 1): VPU multiply + lane reduce ----
    # Avoids any MXU/XLU transpose of the [blk, H] activation; the [blk, 1]
    # column store is only blk/8 masked stores (negligible).
    z = jnp.sum(h2 * w3_ref[...], axis=-1, keepdims=True) + b3_ref[0, 0]
    o_ref[...] = jax.nn.sigmoid(z).astype(o_ref.dtype)


@functools.partial(jax.jit, static_argnames=("block_b", "compute_dtype"))
def reward_classifier_forward(obs, action, params, *, block_b=2048,
                              compute_dtype=jnp.bfloat16):
    """Pallas forward pass of RewardClassifier.

    obs:    [B, obs_dim] float32
    action: [B, action_dim] float32
    params: dict with w1 [D,H], b1 [1,H], w2 [H,H], b2 [1,H], w3 [H,1], b3 [1,1]
    returns [B, 1] float32 probabilities in (0, 1)
    """
    B, obs_dim = obs.shape
    act_dim = action.shape[1]
    H = params["w1"].shape[1]

    # Batch tile: as large as possible (amortizes ~0.35 us/step pipeline
    # overhead) but no larger than ceil(B/2) so the grid has >= 2 "parallel"
    # steps that v7x can shard across both TensorCores.  Multiple of 8.
    half = _round_up(_cdiv(B, 2), 8)
    blk = _round_up(max(8, min(int(block_b), half)), 8)
    B_pad = _round_up(B, blk)
    grid = B_pad // blk

    # Inputs stay f32 (cast happens inside the kernel); pad only if needed.
    obs_p, act_p = obs, action
    if B_pad != B:
        obs_p = jnp.pad(obs_p, ((0, B_pad - B), (0, 0)))
        act_p = jnp.pad(act_p, ((0, B_pad - B), (0, 0)))

    # Split W1 so the obs/action concat fuses into the kernel.
    w1 = params["w1"].astype(compute_dtype)
    w1o = w1[:obs_dim, :]
    w1a = w1[obs_dim:, :]
    w2 = params["w2"].astype(compute_dtype)
    w3_row = params["w3"].reshape(1, H).astype(jnp.float32)   # VPU path -> f32
    b1 = params["b1"].reshape(1, H).astype(jnp.float32)
    b2 = params["b2"].reshape(1, H).astype(jnp.float32)
    b3 = params["b3"].reshape(1, 1).astype(jnp.float32)

    full = lambda i: (0, 0)   # weights/biases: whole array every grid step

    out = pl.pallas_call(
        _mlp_kernel,
        out_shape=jax.ShapeDtypeStruct((B_pad, 1), jnp.float32),
        grid_spec=pltpu.PrefetchScalarGridSpec(
            num_scalar_prefetch=0,
            grid=(grid,),
            in_specs=[
                pl.BlockSpec((blk, obs_dim), lambda i: (i, 0)),   # obs tile (f32)
                pl.BlockSpec((blk, act_dim), lambda i: (i, 0)),   # action tile (f32)
                pl.BlockSpec((obs_dim, H), full),                 # W1[:obs_dim]
                pl.BlockSpec((act_dim, H), full),                 # W1[obs_dim:]
                pl.BlockSpec((1, H), full),                       # b1
                pl.BlockSpec((H, H), full),                       # W2
                pl.BlockSpec((1, H), full),                       # b2
                pl.BlockSpec((1, H), full),                       # W3 as row (f32)
                pl.BlockSpec(memory_space=pltpu.MemorySpace.SMEM),  # b3 scalar
            ],
            out_specs=pl.BlockSpec((blk, 1), lambda i: (i, 0)),
        ),
        compiler_params=pltpu.CompilerParams(
            dimension_semantics=("parallel",),
            # Explicit scoped-VMEM cap: raises v5e's 16 MiB default for the
            # larger tiles, stays well under v7x's 64 MiB physical VMEM.
            # blk=2048 uses roughly 13-20 MiB including double buffering.
            vmem_limit_bytes=32 * 1024 * 1024,
        ),
    )(obs_p, act_p, w1o, w1a, b1, w2, b2, w3_row, b3)

    return out[:B]


def init_params(key, obs_dim, action_dim, hidden_dim):
    """Deterministic init mimicking PyTorch nn.Linear default U[-1/sqrt(fan_in), 1/sqrt(fan_in)]."""
    d_in = obs_dim + action_dim
    keys = jax.random.split(key, 6)

    def uni(k, shape, fan_in):
        bound = 1.0 / jnp.sqrt(float(fan_in))
        return jax.random.uniform(k, shape, jnp.float32, -bound, bound)

    return {
        "w1": uni(keys[0], (d_in, hidden_dim), d_in),
        "b1": uni(keys[1], (1, hidden_dim), d_in),
        "w2": uni(keys[2], (hidden_dim, hidden_dim), hidden_dim),
        "b2": uni(keys[3], (1, hidden_dim), hidden_dim),
        "w3": uni(keys[4], (hidden_dim, 1), hidden_dim),
        "b3": uni(keys[5], (1, 1), hidden_dim),
    }


def _reference_forward(obs, action, params):
    x = jnp.concatenate([obs, action], axis=-1)
    h1 = jnp.maximum(x @ params["w1"] + params["b1"], 0.0)
    h2 = jnp.maximum(h1 @ params["w2"] + params["b2"], 0.0)
    return jax.nn.sigmoid(h2 @ params["w3"] + params["b3"])


if __name__ == "__main__":
    key = jax.random.PRNGKey(0)
    k_obs, k_act, k_par, k_obs2, k_act2 = jax.random.split(key, 5)

    # Small shapes consistent with the module (hidden_dim default = 256).
    B, OBS_DIM, ACT_DIM, HIDDEN = 8, 24, 8, 256
    obs = jax.random.normal(k_obs, (B, OBS_DIM), jnp.float32)
    action = jax.random.normal(k_act, (B, ACT_DIM), jnp.float32)
    params = init_params(k_par, OBS_DIM, ACT_DIM, HIDDEN)

    out = jax.block_until_ready(reward_classifier_forward(obs, action, params))
    ref = _reference_forward(obs, action, params)
    assert out.shape == (B, 1)
    assert bool(jnp.all(jnp.isfinite(out)))
    # bf16 MXU inputs with f32 accumulation: compare against the f32 reference
    # with a tolerance that covers bf16 rounding.
    assert jnp.allclose(out, ref, atol=2e-2, rtol=2e-2), float(
        jnp.max(jnp.abs(out - ref)))

    # Non-divisible batch: adaptive tile -> blk=152, grid=2 (exercises padding
    # and the >=2-step grid used for v7x megacore sharding).
    B2 = 300
    obs2 = jax.random.normal(k_obs2, (B2, OBS_DIM), jnp.float32)
    act2 = jax.random.normal(k_act2, (B2, ACT_DIM), jnp.float32)
    out2 = jax.block_until_ready(reward_classifier_forward(obs2, act2, params))
    ref2 = _reference_forward(obs2, act2, params)
    assert out2.shape == (B2, 1)
    assert jnp.allclose(out2, ref2, atol=2e-2, rtol=2e-2), float(
        jnp.max(jnp.abs(out2 - ref2)))

    # Small forced tile -> multi-step grid (exercises the pipelined loop).
    out3 = jax.block_until_ready(
        reward_classifier_forward(obs2, act2, params, block_b=64))
    assert out3.shape == (B2, 1)
    assert jnp.allclose(out3, ref2, atol=2e-2, rtol=2e-2), float(
        jnp.max(jnp.abs(out3 - ref2)))

    print("KERNEL_OK")
</pallas_src>

<mosaic_0001>
module attributes {stable_mosaic.version = 11 : i64} {
  func.func @_mlp_kernel(%arg0: i32, %arg1: memref<8x24xf32, #tpu.memory_space<vmem>>, %arg2: memref<8x8xf32, #tpu.memory_space<vmem>>, %arg3: memref<24x256xbf16, #tpu.memory_space<vmem>>, %arg4: memref<8x256xbf16, #tpu.memory_space<vmem>>, %arg5: memref<1x256xf32, #tpu.memory_space<vmem>>, %arg6: memref<256x256xbf16, #tpu.memory_space<vmem>>, %arg7: memref<1x256xf32, #tpu.memory_space<vmem>>, %arg8: memref<1x256xf32, #tpu.memory_space<vmem>>, %arg9: memref<1x1xf32, #tpu.memory_space<smem>>, %arg10: memref<8x1xf32, #tpu.memory_space<vmem>>) attributes {dimension_semantics = [#tpu.dimension_semantics<parallel>], iteration_bounds = array<i64: 1>, scalar_prefetch = 0 : i64, scratch_operands = 0 : i64, tpu.core_type = #tpu.core_type<tc>, window_params = [{transform_indices = @transform_0, window_bounds = array<i64: 8, 24>}, {transform_indices = @transform_1, window_bounds = array<i64: 8, 8>}, {pipeline_mode = #tpu.pipeline_mode<synchronous>, transform_indices = @transform_2, window_bounds = array<i64: 24, 256>}, {pipeline_mode = #tpu.pipeline_mode<synchronous>, transform_indices = @transform_3, window_bounds = array<i64: 8, 256>}, {pipeline_mode = #tpu.pipeline_mode<synchronous>, transform_indices = @transform_4, window_bounds = array<i64: 1, 256>}, {pipeline_mode = #tpu.pipeline_mode<synchronous>, transform_indices = @transform_5, window_bounds = array<i64: 256, 256>}, {pipeline_mode = #tpu.pipeline_mode<synchronous>, transform_indices = @transform_6, window_bounds = array<i64: 1, 256>}, {pipeline_mode = #tpu.pipeline_mode<synchronous>, transform_indices = @transform_7, window_bounds = array<i64: 1, 256>}, {transform_indices = @transform_8, window_bounds = array<i64: 1, 1>}, {transform_indices = @transform_9, window_bounds = array<i64: 8, 1>}]} {
    %c0 = arith.constant 0 : index
    %c0_0 = arith.constant 0 : index
    %0 = vector.load %arg1[%c0, %c0_0] : memref<8x24xf32, #tpu.memory_space<vmem>>, vector<8x24xf32>
    %1 = arith.truncf %0 : vector<8x24xf32> to vector<8x24xbf16>
    %c0_1 = arith.constant 0 : index
    %c0_2 = arith.constant 0 : index
    %2 = vector.load %arg2[%c0_1, %c0_2] : memref<8x8xf32, #tpu.memory_space<vmem>>, vector<8x8xf32>
    %3 = arith.truncf %2 : vector<8x8xf32> to vector<8x8xbf16>
    %c0_3 = arith.constant 0 : index
    %c0_4 = arith.constant 0 : index
    %4 = vector.load %arg3[%c0_3, %c0_4] : memref<24x256xbf16, #tpu.memory_space<vmem>>, vector<24x256xbf16>
    %cst = arith.constant dense<0.000000e+00> : vector<8x256xf32>
    %5 = tpu.matmul %1, %4, %cst {dimension_numbers = #tpu.dot_dimension_numbers<[1], [0], [0], [1], [0, 0, 1, 1], [], []>} : vector<8x24xbf16>, vector<24x256xbf16>, vector<8x256xf32> -> vector<8x256xf32>
    %c0_5 = arith.constant 0 : index
    %c0_6 = arith.constant 0 : index
    %6 = vector.load %arg4[%c0_5, %c0_6] : memref<8x256xbf16, #tpu.memory_space<vmem>>, vector<8x256xbf16>
    %cst_7 = arith.constant dense<0.000000e+00> : vector<8x256xf32>
    %7 = tpu.matmul %3, %6, %cst_7 {dimension_numbers = #tpu.dot_dimension_numbers<[1], [0], [0], [1], [0, 0, 1, 1], [], []>} : vector<8x8xbf16>, vector<8x256xbf16>, vector<8x256xf32> -> vector<8x256xf32>
    %8 = arith.addf %5, %7 : vector<8x256xf32>
    %c0_8 = arith.constant 0 : index
    %c0_9 = arith.constant 0 : index
    %9 = vector.load %arg5[%c0_8, %c0_9] : memref<1x256xf32, #tpu.memory_space<vmem>>, vector<1x256xf32>
    %10 = vector.broadcast %9 : vector<1x256xf32> to vector<8x256xf32>
    %11 = arith.addf %8, %10 : vector<8x256xf32>
    %cst_10 = arith.constant 0.000000e+00 : f32
    %12 = vector.broadcast %cst_10 : f32 to vector<8x256xf32>
    %13 = arith.maximumf %11, %12 : vector<8x256xf32>
    %14 = arith.truncf %13 : vector<8x256xf32> to vector<8x256xbf16>
    %c0_11 = arith.constant 0 : index
    %c0_12 = arith.constant 0 : index
    %15 = vector.load %arg6[%c0_11, %c0_12] : memref<256x256xbf16, #tpu.memory_space<vmem>>, vector<256x256xbf16>
    %cst_13 = arith.constant dense<0.000000e+00> : vector<8x256xf32>
    %16 = tpu.matmul %14, %15, %cst_13 {dimension_numbers = #tpu.dot_dimension_numbers<[1], [0], [0], [1], [0, 0, 1, 1], [], []>} : vector<8x256xbf16>, vector<256x256xbf16>, vector<8x256xf32> -> vector<8x256xf32>
    %c0_14 = arith.constant 0 : index
    %c0_15 = arith.constant 0 : index
    %17 = vector.load %arg7[%c0_14, %c0_15] : memref<1x256xf32, #tpu.memory_space<vmem>>, vector<1x256xf32>
    %18 = vector.broadcast %17 : vector<1x256xf32> to vector<8x256xf32>
    %19 = arith.addf %16, %18 : vector<8x256xf32>
    %cst_16 = arith.constant 0.000000e+00 : f32
    %20 = vector.broadcast %cst_16 : f32 to vector<8x256xf32>
    %21 = arith.maximumf %19, %20 : vector<8x256xf32>
    %c0_17 = arith.constant 0 : index
    %c0_18 = arith.constant 0 : index
    %22 = vector.load %arg8[%c0_17, %c0_18] : memref<1x256xf32, #tpu.memory_space<vmem>>, vector<1x256xf32>
    %23 = vector.broadcast %22 : vector<1x256xf32> to vector<8x256xf32>
    %24 = arith.mulf %21, %23 : vector<8x256xf32>
    %cst_19 = arith.constant dense<0.000000e+00> : vector<8xf32>
    %25 = vector.multi_reduction <add>, %24, %cst_19 [1] : vector<8x256xf32> to vector<8xf32>
    %26 = vector.shape_cast %25 : vector<8xf32> to vector<8x1xf32>
    %c0_20 = arith.constant 0 : index
    %c0_21 = arith.constant 0 : index
    %27 = memref.load %arg9[%c0_20, %c0_21] : memref<1x1xf32, #tpu.memory_space<smem>>
    %28 = vector.broadcast %27 : f32 to vector<8x1xf32>
    %29 = arith.addf %26, %28 : vector<8x1xf32>
    %30 = arith.negf %29 : vector<8x1xf32>
    %31 = math.exp %30 : vector<8x1xf32>
    %cst_22 = arith.constant 1.000000e+00 : f32
    %32 = vector.broadcast %cst_22 : f32 to vector<8x1xf32>
    %33 = arith.addf %32, %31 : vector<8x1xf32>
    %34 = arith.divf %32, %33 : vector<8x1xf32>
    %c0_23 = arith.constant 0 : index
    %c0_24 = arith.constant 0 : index
    %35 = vector.load %arg10[%c0_23, %c0_24] : memref<8x1xf32, #tpu.memory_space<vmem>>, vector<8x1xf32>
    tpu.vector_store %arg10[%c0_23, %c0_24], %34 {strides = array<i32>} : memref<8x1xf32, #tpu.memory_space<vmem>>, vector<8x1xf32>,
    return
  }
  func.func @transform_0(%arg0: i32) -> (i32, i32) {
    %c0_i32 = arith.constant 0 : i32
    %c0_i32_0 = arith.constant 0 : i32
    return %arg0, %c0_i32 : i32, i32
  }
  func.func @transform_1(%arg0: i32) -> (i32, i32) {
    %c0_i32 = arith.constant 0 : i32
    %c0_i32_0 = arith.constant 0 : i32
    return %arg0, %c0_i32 : i32, i32
  }
  func.func @transform_2(%arg0: i32) -> (i32, i32) {
    %c0_i32 = arith.constant 0 : i32
    %c0_i32_0 = arith.constant 0 : i32
    %c0_i32_1 = arith.constant 0 : i32
    return %c0_i32, %c0_i32_0 : i32, i32
  }
  func.func @transform_3(%arg0: i32) -> (i32, i32) {
    %c0_i32 = arith.constant 0 : i32
    %c0_i32_0 = arith.constant 0 : i32
    %c0_i32_1 = arith.constant 0 : i32
    return %c0_i32, %c0_i32_0 : i32, i32
  }
  func.func @transform_4(%arg0: i32) -> (i32, i32) {
    %c0_i32 = arith.constant 0 : i32
    %c0_i32_0 = arith.constant 0 : i32
    %c0_i32_1 = arith.constant 0 : i32
    return %c0_i32, %c0_i32_0 : i32, i32
  }
  func.func @transform_5(%arg0: i32) -> (i32, i32) {
    %c0_i32 = arith.constant 0 : i32
    %c0_i32_0 = arith.constant 0 : i32
    %c0_i32_1 = arith.constant 0 : i32
    return %c0_i32, %c0_i32_0 : i32, i32
  }
  func.func @transform_6(%arg0: i32) -> (i32, i32) {
    %c0_i32 = arith.constant 0 : i32
    %c0_i32_0 = arith.constant 0 : i32
    %c0_i32_1 = arith.constant 0 : i32
    return %c0_i32, %c0_i32_0 : i32, i32
  }
  func.func @transform_7(%arg0: i32) -> (i32, i32) {
    %c0_i32 = arith.constant 0 : i32
    %c0_i32_0 = arith.constant 0 : i32
    %c0_i32_1 = arith.constant 0 : i32
    return %c0_i32, %c0_i32_0 : i32, i32
  }
  func.func @transform_8(%arg0: i32) -> (i32, i32) {
    %c0_i32 = arith.constant 0 : i32
    %c0_i32_0 = arith.constant 0 : i32
    %c0_i32_1 = arith.constant 0 : i32
    return %c0_i32, %c0_i32_0 : i32, i32
  }
  func.func @transform_9(%arg0: i32) -> (i32, i32) {
    %c0_i32 = arith.constant 0 : i32
    %c0_i32_0 = arith.constant 0 : i32
    return %arg0, %c0_i32 : i32, i32
  }
}

</mosaic_0001>

<bundles_post_ra>
// kernel: reward_classifier_forward.1
= control target key start
LH: loop header
LB: loop body
LE: loop exit
PB: predicated region body
PF: predicated region fallthrough
CT: control target
= control target key end

     0   :  { %vm51_vm0 = vcmask 1043456   ;;  %vm47_vm1 = vcmask 64512   ;;  %vm99_vm2 = vcmask 195584   ;;  %vm432_vm6 = vcmask 7168   ;;  %s904_s2 = inlined_call_operand.vmem [shape: bf16[24,256], index: 2, kind: input, shape index: {}]   ;;  %s905_s3 = inlined_call_operand.vmem [shape: bf16[8,256], index: 3, kind: input, shape index: {}]   ;;  %s906_s1 = inlined_call_operand.vmem [shape: f32[8,8], index: 1, kind: input, shape index: {}]   ;;  %s907_s5 = inlined_call_operand.vmem [shape: bf16[256,256], index: 5, kind: input, shape index: {}]   ;;  %s908_s0 = inlined_call_operand.vmem [shape: f32[8,24], index: 0, kind: input, shape index: {}]   ;;  %s909_s4 = inlined_call_operand.vmem [shape: f32[1,256], index: 4, kind: input, shape index: {}]   ;;  %s910_s6 = inlined_call_operand.vmem [shape: f32[1,256], index: 6, kind: input, shape index: {}]   ;;  %s911_s7 = inlined_call_operand.vmem [shape: f32[1,256], index: 7, kind: input, shape index: {}]   ;;  %s912_s8 = inlined_call_operand.<no memory space> [shape: f32[1,1], index: 8, kind: input, shape index: {}]   ;;  %s913_s9 = inlined_call_operand.vmem [shape: f32[8,1], index: 9, kind: output, shape index: {}]  }
   0x1   :  { %v40_v0 = vld [vmem:[%s904_s2 + $0x10] sm:$0xff]  ;;  %v41_v1 = vld [vmem:[%s905_s3] sm:$0xff]  ;;  %v580_v7 = vld [vmem:[%s904_s2 + $0x4] sm:$0xf0] }
   0x2   :  { %v91_v2 = vunpack.c.l.b16 %v40_v0  ;;  %v92_v3 = vunpack.c.h.b16 %v40_v0  ;;  %v43_v4 = vunpack.c.l.b16 %v41_v1  ;;  %v44_v5 = vunpack.c.h.b16 %v41_v1  ;;  %v442_v6 = vld [vmem:[%s904_s2] sm:$0xf]  ;;  %v579_v8 = vld [vmem:[%s904_s2 + $0x4] sm:$0xf]  ;;  %v444_v9 = vld [vmem:[%s904_s2 + $0x8] sm:$0xf0] }
   0x3   :  { %v36_v10 = vld [vmem:[%s906_s1] sm:$0xff]  ;;  %v508_v11 = vld [vmem:[%s907_s5 + $0x70] sm:$0xf]  ;;  %v596_v16 = vld [vmem:[%s907_s5 + $0x74] sm:$0xf0]  ;;  %v443_v29 = vor.u32 %v580_v7, %v442_v6  ;;  %v447_v30 = vor.u32 %v579_v8, %v444_v9 }
   0x4   :  { %v95_v12 = vpack.c.b16 %v91_v2, %v91_v2  ;;  %v96_v13 = vpack.c.b16 %v92_v3, %v92_v3  ;;  %v45_v14 = vpack.c.b16 %v43_v4, %v43_v4  ;;  %v46_v15 = vpack.c.b16 %v44_v5, %v44_v5  ;;  %v572_v17 = vld [vmem:[%s907_s5 + $0xf0] sm:$0xf]  ;;  %v612_v18 = vld [vmem:[%s907_s5 + $0xf4] sm:$0xf0]  ;;  %v595_v21 = vld [vmem:[%s907_s5 + $0x74] sm:$0xf] }
   0x5   :  { %v509_v19 = vor.u32 %v596_v16, %v508_v11  ;;  %v573_v20 = vor.u32 %v612_v18, %v572_v17  ;;  %v510_v22 = vld [vmem:[%s907_s5 + $0x78] sm:$0xf0]  ;;  %v611_v23 = vld [vmem:[%s907_s5 + $0xf4] sm:$0xf]  ;;  %v34_v31 = vld [vmem:[%s908_s0] sm:$0xff]  ;;  %v37_v33 = vpack.c.bf16 %v36_v10, %v36_v10 }
   0x6   :  { %v104_v24 = vsel %vm51_vm0, %v95_v12, 0  ;;  %v107_v25 = vsel %vm51_vm0, %v96_v13, 0  ;;  %v53_v26 = vsel %vm51_vm0, %v45_v14, 0  ;;  %v56_v27 = vsel %vm51_vm0, %v46_v15, 0  ;;  %v574_v28 = vld [vmem:[%s907_s5 + $0xf8] sm:$0xf0] }
   0x7   :  { %115 = vmatpush.bf16.msra.mxu2 %v104_v24  ;;  %128 = vmatpush.bf16.msra.mxu3 %v107_v25  ;;  %v500_v32 = vld [vmem:[%s907_s5 + $0x60] sm:$0xf]  ;;  %v594_v34 = vld [vmem:[%s907_s5 + $0x64] sm:$0xf0]  ;;  %v513_v37 = vor.u32 %v595_v21, %v510_v22  ;;  %v577_v38 = vor.u32 %v611_v23, %v574_v28  ;;  %v593_v39 = vld [vmem:[%s907_s5 + $0x64] sm:$0xf]  ;;  %v35_v40 = vpack.c.bf16 %v34_v31, %v34_v31 }
   0x8   :  { %65 = vmatpush.bf16.msra.mxu0 %v53_v26  ;;  %78 = vmatpush.bf16.msra.mxu1 %v56_v27  ;;  %v564_v35 = vld [vmem:[%s907_s5 + $0xe0] sm:$0xf]  ;;  %v610_v36 = vld [vmem:[%s907_s5 + $0xe4] sm:$0xf0]  ;;  %v502_v41 = vld [vmem:[%s907_s5 + $0x68] sm:$0xf0]  ;;  %v501_v44 = vor.u32 %v594_v34, %v500_v32 }
   0x9   :  { %v609_v42 = vld [vmem:[%s907_s5 + $0xe4] sm:$0xf]  ;;  %v566_v43 = vld [vmem:[%s907_s5 + $0xe8] sm:$0xf0]  ;;  %v565_v45 = vor.u32 %v610_v36, %v564_v35  ;;  %v492_v46 = vld [vmem:[%s907_s5 + $0x50] sm:$0xf]  ;;  %v505_v50 = vor.u32 %v593_v39, %v502_v41 }
   0xa   :  { %v592_v47 = vld [vmem:[%s907_s5 + $0x54] sm:$0xf0]  ;;  %v556_v48 = vld [vmem:[%s907_s5 + $0xd0] sm:$0xf]  ;;  %v569_v51 = vor.u32 %v609_v42, %v566_v43  ;;  %v591_v52 = vld [vmem:[%s907_s5 + $0x54] sm:$0xf] }
   0xb   :  { %116 = vmatpush.bf16.msra.mxu2 %v443_v29  ;;  %129 = vmatpush.bf16.msra.mxu3 %v447_v30  ;;  %v608_v49 = vld [vmem:[%s907_s5 + $0xd4] sm:$0xf0]  ;;  %v494_v53 = vld [vmem:[%s907_s5 + $0x58] sm:$0xf0]  ;;  %v607_v54 = vld [vmem:[%s907_s5 + $0xd4] sm:$0xf]  ;;  %v493_v56 = vor.u32 %v592_v47, %v492_v46 }
   0xc   :  { %345 = vmatpush.bf16.msrb.mxu0 %v509_v19  ;;  %358 = vmatpush.bf16.msrb.mxu1 %v573_v20  ;;  %v558_v55 = vld [vmem:[%s907_s5 + $0xd8] sm:$0xf0]  ;;  %v557_v57 = vor.u32 %v608_v49, %v556_v48  ;;  %v484_v58 = vld [vmem:[%s907_s5 + $0x40] sm:$0xf]  ;;  %v590_v59 = vld [vmem:[%s907_s5 + $0x44] sm:$0xf0]  ;;  %v497_v62 = vor.u32 %v591_v52, %v494_v53 }
   0xd   :  { %438 = vmatmul.msk.bf16.vlgmr.msra.gmra.mxu0 %vm47_vm1, %v37_v33  ;;  %439 = vmatmul.msk.bf16.vlgmr.msra.gmra.mxu1 %vm47_vm1, %v37_v33  ;;  %v548_v60 = vld [vmem:[%s907_s5 + $0xc0] sm:$0xf]  ;;  %v606_v61 = vld [vmem:[%s907_s5 + $0xc4] sm:$0xf0]  ;;  %v561_v63 = vor.u32 %v607_v54, %v558_v55  ;;  %v589_v0 = vld [vmem:[%s907_s5 + $0x44] sm:$0xf]  ;;  %v485_v4 = vor.u32 %v590_v59, %v484_v58 }
   0xe   :  { %448 = vmatmul.msk.bf16.vlgmr.msra.gmra.mxu2 %vm99_vm2, %v35_v40  ;;  %449 = vmatmul.msk.bf16.vlgmr.msra.gmra.mxu3 %vm99_vm2, %v35_v40  ;;  %v486_v1 = vld [vmem:[%s907_s5 + $0x48] sm:$0xf0]  ;;  %v605_v2 = vld [vmem:[%s907_s5 + $0xc4] sm:$0xf]  ;;  %v549_v5 = vor.u32 %v606_v61, %v548_v60  ;;  %v476_v8 = vld [vmem:[%s907_s5 + $0x30] sm:$0xf] }
   0xf   :  { %371 = vmatpush.bf16.msrb.mxu2 %v513_v37  ;;  %384 = vmatpush.bf16.msrb.mxu3 %v577_v38  ;;  %v550_v3 = vld [vmem:[%s907_s5 + $0xc8] sm:$0xf0]  ;;  %v489_v6 = vor.u32 %v589_v0, %v486_v1  ;;  %v588_v9 = vld [vmem:[%s907_s5 + $0x34] sm:$0xf0]  ;;  %v540_v10 = vld [vmem:[%s907_s5 + $0xb0] sm:$0xf] }
  0x10   :  { %346 = vmatpush.bf16.msrb.mxu0 %v501_v44  ;;  %359 = vmatpush.bf16.msrb.mxu1 %v565_v45  ;;  %v553_v7 = vor.u32 %v605_v2, %v550_v3  ;;  %v477_v11 = vor.u32 %v588_v9, %v476_v8  ;;  %v604_v12 = vld [vmem:[%s907_s5 + $0xb4] sm:$0xf0]  ;;  %v587_v13 = vld [vmem:[%s907_s5 + $0x34] sm:$0xf]  ;;  %v478_v14 = vld [vmem:[%s907_s5 + $0x38] sm:$0xf0] }
  0x11   :  { %v541_v15 = vor.u32 %v604_v12, %v540_v10  ;;  %v481_v16 = vor.u32 %v587_v13, %v478_v14  ;;  %v603_v17 = vld [vmem:[%s907_s5 + $0xb4] sm:$0xf]  ;;  %v542_v18 = vld [vmem:[%s907_s5 + $0xb8] sm:$0xf0]  ;;  %v468_v19 = vld [vmem:[%s907_s5 + $0x20] sm:$0xf] }
  0x12   :  { %v545_v20 = vor.u32 %v603_v17, %v542_v18  ;;  %v586_v21 = vld [vmem:[%s907_s5 + $0x24] sm:$0xf0]  ;;  %v532_v22 = vld [vmem:[%s907_s5 + $0xa0] sm:$0xf]  ;;  %v585_v26 = vld [vmem:[%s907_s5 + $0x24] sm:$0xf] }
  0x13   :  { %372 = vmatpush.bf16.msrb.mxu2 %v505_v50  ;;  %385 = vmatpush.bf16.msrb.mxu3 %v569_v51  ;;  %v602_v23 = vld [vmem:[%s907_s5 + $0xa4] sm:$0xf0]  ;;  %v469_v24 = vor.u32 %v586_v21, %v468_v19  ;;  %v470_v27 = vld [vmem:[%s907_s5 + $0x28] sm:$0xf0]  ;;  %v601_v28 = vld [vmem:[%s907_s5 + $0xa4] sm:$0xf] }
  0x14   :  { %347 = vmatpush.bf16.msrb.mxu0 %v493_v56  ;;  %360 = vmatpush.bf16.msrb.mxu1 %v557_v57  ;;  %v533_v25 = vor.u32 %v602_v23, %v532_v22  ;;  %v473_v29 = vor.u32 %v585_v26, %v470_v27  ;;  %v534_v30 = vld [vmem:[%s907_s5 + $0xa8] sm:$0xf0]  ;;  %v460_v32 = vld [vmem:[%s907_s5 + $0x10] sm:$0xf]  ;;  %v584_v33 = vld [vmem:[%s907_s5 + $0x14] sm:$0xf0] }
  0x15   :  { %v537_v31 = vor.u32 %v601_v28, %v534_v30  ;;  %v461_v34 = vor.u32 %v584_v33, %v460_v32  ;;  %v524_v35 = vld [vmem:[%s907_s5 + $0x90] sm:$0xf]  ;;  %v600_v36 = vld [vmem:[%s907_s5 + $0x94] sm:$0xf0]  ;;  %v583_v38 = vld [vmem:[%s907_s5 + $0x14] sm:$0xf] }
  0x16   :  { %v525_v37 = vor.u32 %v600_v36, %v524_v35  ;;  %v462_v39 = vld [vmem:[%s907_s5 + $0x18] sm:$0xf0]  ;;  %v599_v41 = vld [vmem:[%s907_s5 + $0x94] sm:$0xf]  ;;  %v452_v44 = vld [vmem:[%s907_s5] sm:$0xf] }
  0x17   :  { %373 = vmatpush.bf16.msrb.mxu2 %v497_v62  ;;  %386 = vmatpush.bf16.msrb.mxu3 %v561_v63  ;;  %v465_v40 = vor.u32 %v583_v38, %v462_v39  ;;  %v526_v42 = vld [vmem:[%s907_s5 + $0x98] sm:$0xf0]  ;;  %v582_v45 = vld [vmem:[%s907_s5 + $0x4] sm:$0xf0]  ;;  %v516_v46 = vld [vmem:[%s907_s5 + $0x80] sm:$0xf] }
  0x18   :  { %348 = vmatpush.bf16.msrb.mxu0 %v485_v4  ;;  %361 = vmatpush.bf16.msrb.mxu1 %v549_v5  ;;  %v529_v43 = vor.u32 %v599_v41, %v526_v42  ;;  %v453_v47 = vor.u32 %v582_v45, %v452_v44  ;;  %v598_v48 = vld [vmem:[%s907_s5 + $0x84] sm:$0xf0]  ;;  %v581_v49 = vld [vmem:[%s907_s5 + $0x4] sm:$0xf]  ;;  %v454_v50 = vld [vmem:[%s907_s5 + $0x8] sm:$0xf0] }
  0x19   :  { %v517_v51 = vor.u32 %v598_v48, %v516_v46  ;;  %v457_v52 = vor.u32 %v581_v49, %v454_v50  ;;  %v597_v53 = vld [vmem:[%s907_s5 + $0x84] sm:$0xf]  ;;  %v518_v54 = vld [vmem:[%s907_s5 + $0x88] sm:$0xf0]  ;;  %v135_v58 = vld [vmem:[%s909_s4] sm:$0x3] }
  0x1a   :  { %v521_v55 = vor.u32 %v597_v53, %v518_v54  ;;  %v137_v59 = vperm.slane %v135_v58, 0  ;;  %v138_v62 = vperm.slane %v135_v58, 1  ;;  %v399_v19 = vld [vmem:[%s911_s7] sm:$0x3] }
  0x1b   :  { %374 = vmatpush.bf16.msrb.mxu2 %v489_v6  ;;  %387 = vmatpush.bf16.msrb.mxu3 %v553_v7  ;;  %v401_v26 = vperm.slane %v399_v19, 0  ;;  %v402_v27 = vperm.slane %v399_v19, 1 }
  0x1c   :  { %349 = vmatpush.bf16.msrb.mxu0 %v477_v11  ;;  %362 = vmatpush.bf16.msrb.mxu1 %v541_v15  ;;  %v179_v11 = vld [vmem:[%s910_s6] sm:$0x3] }
  0x1d   :  { %v181_v12 = vperm.slane %v179_v11, 0 }
  0x1f   :  { %375 = vmatpush.bf16.msrb.mxu2 %v481_v16  ;;  %388 = vmatpush.bf16.msrb.mxu3 %v545_v20  ;;  %v182_v16 = vperm.slane %v179_v11, 1 }
  0x20   :  { %350 = vmatpush.bf16.msrb.mxu0 %v469_v24  ;;  %363 = vmatpush.bf16.msrb.mxu1 %v533_v25 }
  0x23   :  { %376 = vmatpush.bf16.msrb.mxu2 %v473_v29  ;;  %389 = vmatpush.bf16.msrb.mxu3 %v537_v31 }
  0x24   :  { %351 = vmatpush.bf16.msrb.mxu0 %v461_v34  ;;  %364 = vmatpush.bf16.msrb.mxu1 %v525_v37  ;;  %v411_v34 = vstv %s912_s8 }
  0x27   :  { %377 = vmatpush.bf16.msrb.mxu2 %v465_v40  ;;  %390 = vmatpush.bf16.msrb.mxu3 %v529_v43 }
  0x28   :  { %352 = vmatpush.bf16.msrb.mxu0 %v453_v47  ;;  %365 = vmatpush.bf16.msrb.mxu1 %v517_v51 }
  0x2b   :  { %378 = vmatpush.bf16.msrb.mxu2 %v457_v52  ;;  %391 = vmatpush.bf16.msrb.mxu3 %v521_v55 }
  0x8a   :  { %v67_v56 = vpop.f32.mrf.mxu0  ;;  %v80_v57 = vpop.f32.mrf.mxu1 }
  0x91   :  { %v118_v61 = vpop.f32.mrf.mxu2  ;;  %v131_v0 = vpop.f32.mrf.mxu3 }
  0x92   :  { %v69_v60 = vpop.f32.mrf.mxu0  ;;  %v119_v63 = vadd.f32 %v118_v61, %v67_v56  ;;  %v82_v1 = vpop.f32.mrf.mxu1  ;;  %v132_v2 = vadd.f32 %v131_v0, %v80_v57 }
  0x94   :  { %v141_v3 = vadd.f32 %v137_v59, %v119_v63  ;;  %v142_v4 = vadd.f32 %v138_v62, %v132_v2 }
  0x96   :  { %v143_v5 = vmax.f32 %v141_v3, 0.0  ;;  %v144_v6 = vmax.f32 %v142_v4, 0.0 }
  0x98   :  { %v145_v7 = vpack.c.bf16 %v143_v5, %v143_v5  ;;  %v146_v8 = vpack.c.bf16 %v144_v6, %v144_v6 }
  0x99   :  { %v120_v9 = vpop.f32.mrf.mxu2  ;;  %v133_v10 = vpop.f32.mrf.mxu3 }
  0x9a   :  { %353 = vmatmul.bf16.vlgmr.msrb.gmra.mxu0 %v145_v7  ;;  %379 = vmatmul.bf16.vlgmr.msrb.gmra.mxu2 %v145_v7 }
  0x9b   :  { %366 = vmatmul.bf16.vlgmr.msrb.gmra.mxu1 %v146_v8  ;;  %392 = vmatmul.bf16.vlgmr.msrb.gmra.mxu3 %v146_v8 }
 0x117   :  { %v354_v13 = vpop.f32.mrf.mxu0 }
 0x118   :  { %v355_v14 = vadd.f32 %v354_v13, %v181_v12  ;;  %v367_v15 = vpop.f32.mrf.mxu1 }
 0x11a   :  { %v368_v17 = vadd.f32 %v367_v15, %v355_v14 }
 0x11c   :  { %v397_v23 = vmax.f32 %v368_v17, 0.0 }
 0x11d   :  { %v380_v18 = vpop.f32.mrf.mxu2 }
 0x11e   :  { %v381_v20 = vadd.f32 %v380_v18, %v182_v16  ;;  %v393_v21 = vpop.f32.mrf.mxu3  ;;  %v405_v29 = vmul.f32 %v401_v26, %v397_v23 }
 0x11f   :  { %v356_v22 = vpop.f32.mrf.mxu0 }
 0x120   :  { %v394_v24 = vadd.f32 %v393_v21, %v381_v20  ;;  %v369_v25 = vpop.f32.mrf.mxu1 }
 0x122   :  { %v398_v28 = vmax.f32 %v394_v24, 0.0 }
 0x124   :  { %v406_v30 = vmul.f32 %v402_v27, %v398_v28 }
 0x125   :  { %v382_v31 = vpop.f32.mrf.mxu2 }
 0x126   :  { %v395_v32 = vpop.f32.mrf.mxu3  ;;  %v407_v33 = vadd.f32 %v406_v30, %v405_v29 }
 0x128   :  { %408 = vadd.xlane.f32.xlu0 %v407_v33 }
 0x19b   :  { %v409_v35 = vpop.xlane.xlu0 %408 }
 0x19c   :  { %v412_v36 = vadd.f32 %v411_v34, %v409_v35 }
 0x19e   :  { %v578_v37 = vmul.f32 -1.442695, %v412_v36 }
 0x1a0   :  { %613 = vpow2.f32 %v578_v37 }
 0x1a6   :  { %v614_v38 = vpop.eup %613 }
 0x1a7   :  { %v416_v39 = vadd.f32 1.0, %v614_v38 }
 0x1a9   :  { %615 = vrcp.f32 %v416_v39  ;;  %v428_v43 = vand.u32 2147483648, %v416_v39  ;;  %v426_v45 = vand.u32 2147483647, %v416_v39  ;;  %vm422_vm4 = vweird.f32 %v416_v39 }
 0x1ab   :  { %v429_v47 = vor.u32 1.1754944e-38, %v428_v43  ;;  %vm427_vm7 = vcmp.eq.f32.partialorder %v426_v45, 8.507059e+37 }
 0x1af   :  { %v616_v40 = vpop.eup %615 }
 0x1b0   :  { %v418_v41 = vmul.f32 %v616_v40, %v416_v39  ;;  %vm423_vm3 = vweird.f32 %v616_v40 }
 0x1b1   :  { %vm424_vm5 = vmor %vm422_vm4, %vm423_vm3 }
 0x1b2   :  { %v419_v42 = vsub.f32 1.0, %v418_v41 }
 0x1b4   :  { %v420_v44 = vmul.f32 %v616_v40, %v419_v42 }
 0x1b6   :  { %v421_v46 = vadd.f32 %v616_v40, %v420_v44 }
 0x1b8   :  { %v425_v48 = vsel %vm424_vm5, %v616_v40, %v421_v46 }
 0x1b9   :  { %v430_v49 = vsel %vm427_vm7, %v429_v47, %v425_v48 }
 0x1ba   :  { %433 = vst.msk [vmem:[%s913_s9] sm:$0xff] %vm432_vm6, %v430_v49 }

</bundles_post_ra>
